<compile_context>
chip_gen: v7x
topology: tpu7x:2x2x1
jax: 0.10.0
libtpu: 0.0.40
codegen_flags: <defaults>
</compile_context>

<pallas_src>
from math import ceil

import numpy as np
import jax
import jax.numpy as jnp
from jax.experimental import pallas as pl
from jax.experimental.pallas import tpu as pltpu

LEAKY_SLOPE = 0.2
BN_EPS = 1e-5


# ----------------------------------------------------------------------------
# Host-side lowering helpers (pure glue, run once).
# ----------------------------------------------------------------------------
def tap_stack_weight(w, co_pad):
    """w: (Cin, Cout, 3) -> (3*co_pad, Cin); row k*co_pad + co = w[:, co, k].
    Rows co >= Cout are zero (keeps each tap's sublane block 8-aligned)."""
    cin, cout, k_taps = w.shape
    out = np.zeros((k_taps * co_pad, cin), dtype=np.float32)
    for k in range(k_taps):
        out[k * co_pad:k * co_pad + cout, :] = w[:, :, k].T
    return out


def spread_stack(l_in, l_out, n_batch):
    """0/1 spread matrix (3*N*L_in, N*L_out) for ConvTranspose1d with
    stride=2, padding=1, kernel=3: tap k scatters sample-n input position i
    to sample-n output position 2*i - 1 + k (when in bounds)."""
    u = np.zeros((3 * n_batch * l_in, n_batch * l_out), dtype=np.float32)
    for k in range(3):
        for n in range(n_batch):
            for i in range(l_in):
                o = 2 * i - 1 + k
                if 0 <= o < l_out:
                    u[(k * n_batch + n) * l_in + i, n * l_out + o] = 1.0
    return u


def build_decoder_params(wlin, blin, w1, w2, w3, b3, gamma1, beta1,
                         gamma2, beta2, signal_dims, n_batch):
    L0 = ceil(signal_dims / 8)
    op1 = int(signal_dims % 8 == 0)
    op2 = int(signal_dims % 4 == 0)
    op3 = int(signal_dims % 2 == 0)
    L1 = 2 * L0 - 1 + op1
    L2 = 2 * L1 - 1 + op2
    L3 = 2 * L2 - 1 + op3

    C1, C2, CP3 = 16, 8, 8        # layer-3 Cout=1 padded to 8 sublane rows

    bf16, f32 = jnp.bfloat16, jnp.float32
    params = (
        jnp.asarray(wlin, bf16),                        # (latent, L0)
        jnp.asarray(blin.reshape(1, L0), f32),
        jnp.asarray(tap_stack_weight(w1, C1), f32),     # (48, 1)   VPU broadcast
        jnp.asarray(spread_stack(L0, L1, n_batch), f32),
        jnp.asarray(gamma1.reshape(C1, 1), f32),
        jnp.asarray(beta1.reshape(C1, 1), f32),
        jnp.asarray(tap_stack_weight(w2, C2), bf16),    # (24, 16)  MXU
        jnp.asarray(spread_stack(L1, L2, n_batch), f32),
        jnp.asarray(gamma2.reshape(C2, 1), f32),
        jnp.asarray(beta2.reshape(C2, 1), f32),
        jnp.asarray(tap_stack_weight(w3, CP3), bf16),   # (24, 8)   MXU
        jnp.asarray(spread_stack(L2, L3, n_batch), f32),
        jnp.asarray(b3.reshape(1, 1), f32),
    )
    dims = {"N": n_batch, "L0": L0, "L1": L1, "L2": L2, "L3": L3,
            "C1": C1, "C2": C2, "CP3": CP3,
            "Lpad": ((n_batch * L3 + 127) // 128) * 128,
            "op": (op1, op2, op3)}
    return params, dims


# ----------------------------------------------------------------------------
# Pallas kernel: entire decoder forward for the whole (small) batch.
# ----------------------------------------------------------------------------
def decoder_pallas(z, params, dims):
    N = dims["N"]
    L3 = dims["L3"]
    Lpad = dims["Lpad"]
    C1, C2, CP3 = dims["C1"], dims["C2"], dims["CP3"]

    def kernel(z_ref, wlin_ref, blin_ref,
               w1_ref, u1_ref, g1_ref, bt1_ref,
               w2_ref, u2_ref, g2_ref, bt2_ref,
               w3_ref, u3_ref, b3_ref, out_ref):

        f32 = jnp.float32

        def leaky(v):
            return jnp.where(v > 0, v, LEAKY_SLOPE * v)

        def batchnorm(y, gamma_col, beta_col):
            # y: (C, N*L) f32.  Training-mode BatchNorm1d: biased batch stats
            # per channel = one lane reduction per row.  Centered two-pass
            # variance (no E[x^2]-E[x]^2 cancellation).
            inv_cnt = 1.0 / float(y.shape[1])
            mean = jnp.sum(y, axis=1, keepdims=True) * inv_cnt      # (C, 1)
            yc = y - mean
            var = jnp.sum(yc * yc, axis=1, keepdims=True) * inv_cnt
            scale = gamma_col * jax.lax.rsqrt(var + BN_EPS)
            return yc * scale + beta_col

        def tap_fold(ybig, co_pad):
            # (3*co_pad, N*L_in) -> (co_pad, 3*N*L_in): move the tap index from
            # a sublane block to a lane block so a single spread matmul places
            # all three taps at their even/odd output positions.
            return jnp.concatenate(
                [ybig[k * co_pad:(k + 1) * co_pad, :] for k in range(3)],
                axis=1)

        def spread(zcat, u_ref):
            # 0/1 interleave matrix kept in f32: exact, no extra bf16 rounding.
            return jnp.dot(zcat, u_ref[...], preferred_element_type=f32)

        # ---- Linear + LeakyReLU: (N, latent) -> (N, L0) --------------------
        h = jnp.dot(z_ref[...].astype(jnp.bfloat16), wlin_ref[...],
                    preferred_element_type=f32) + blin_ref[...]
        h = leaky(h)
        # Unflatten into channel-major layout: (Ci=1, N*L0), sample-major lanes.
        x = jnp.concatenate([h[n:n + 1, :] for n in range(N)], axis=1)

        # ---- Layer 1: ConvT(1, 16) + BN + LeakyReLU -------------------------
        # Cin == 1: channel mix is a pure f32 broadcast multiply (VPU), no MXU.
        ybig = w1_ref[...] * x                              # (3*16, N*L0)
        y = spread(tap_fold(ybig, C1), u1_ref)              # (16, N*L1)
        x = leaky(batchnorm(y, g1_ref[...], bt1_ref[...]))

        # ---- Layer 2: ConvT(16, 8) + BN + LeakyReLU -------------------------
        ybig = jnp.dot(w2_ref[...], x.astype(jnp.bfloat16),
                       preferred_element_type=f32)          # (3*8, N*L1)
        y = spread(tap_fold(ybig, C2), u2_ref)              # (8, N*L2)
        x = leaky(batchnorm(y, g2_ref[...], bt2_ref[...]))

        # ---- Layer 3: ConvT(8, 1) + bias + ReLU ------------------------------
        ybig = jnp.dot(w3_ref[...], x.astype(jnp.bfloat16),
                       preferred_element_type=f32)          # (3*CP3, N*L2)
        y = spread(tap_fold(ybig, CP3), u3_ref)              # (CP3, N*L3)
        y = jnp.maximum(y[0:1, :] + b3_ref[...], 0.0)        # real channel row

        # Lane-dense padded store: one (1, Lpad) row, Lpad a multiple of 128.
        if Lpad > N * L3:
            y = jnp.concatenate(
                [y, jnp.zeros((1, Lpad - N * L3), f32)], axis=1)
        out_ref[...] = y

    args = (z,) + tuple(params)
    out = pl.pallas_call(
        kernel,
        out_shape=jax.ShapeDtypeStruct((1, Lpad), jnp.float32),
        in_specs=[pl.BlockSpec(memory_space=pltpu.MemorySpace.VMEM)] * len(args),
        out_specs=pl.BlockSpec(memory_space=pltpu.MemorySpace.VMEM),
    )(*args)
    # Wrapper-side layout plumbing: drop lane padding, un-flatten samples.
    return out[0, :N * L3].reshape(N, L3)


# ----------------------------------------------------------------------------
# Pure NumPy reference (mirrors PyTorch semantics) for correctness check.
# ----------------------------------------------------------------------------
def np_conv_transpose1d(x, w, stride, pad, outpad, bias=None):
    N, Cin, Lin = x.shape
    _, Cout, K = w.shape
    Lout = (Lin - 1) * stride - 2 * pad + (K - 1) + outpad + 1
    y = np.zeros((N, Cout, Lout), dtype=np.float32)
    for i in range(Lin):
        for k in range(K):
            o = i * stride - pad + k
            if 0 <= o < Lout:
                y[:, :, o] += x[:, :, i] @ w[:, :, k]
    if bias is not None:
        y += bias[None, :, None]
    return y


def np_batchnorm_train(x, gamma, beta, eps=BN_EPS):
    mean = x.mean(axis=(0, 2), keepdims=True)
    var = x.var(axis=(0, 2), keepdims=True)           # biased
    return gamma[None, :, None] * (x - mean) / np.sqrt(var + eps) + beta[None, :, None]


def np_leaky(x):
    return np.where(x > 0, x, LEAKY_SLOPE * x).astype(np.float32)


def np_reference(z, raw):
    wlin, blin, w1, w2, w3, b3, gamma1, beta1, gamma2, beta2, op = raw
    op1, op2, op3 = op
    x = np_leaky(z @ wlin + blin)                      # (N, L0)
    x = x[:, None, :]                                  # unflatten -> (N,1,L0)
    x = np_conv_transpose1d(x, w1, 2, 1, op1)
    x = np_leaky(np_batchnorm_train(x, gamma1, beta1))
    x = np_conv_transpose1d(x, w2, 2, 1, op2)
    x = np_leaky(np_batchnorm_train(x, gamma2, beta2))
    x = np_conv_transpose1d(x, w3, 2, 1, op3, bias=b3)
    x = np.maximum(x, 0.0)
    return x[:, 0, :]                                  # squeeze(dim=1)


# ----------------------------------------------------------------------------
if __name__ == "__main__":
    batch = 2
    latent_dims = 8
    signal_dims = 32
    L0 = ceil(signal_dims / 8)

    key = jax.random.PRNGKey(0)
    ks = jax.random.split(key, 12)
    f32 = np.float32

    z = np.asarray(jax.random.normal(ks[0], (batch, latent_dims)), dtype=f32)
    wlin = np.asarray(jax.random.normal(ks[1], (latent_dims, L0)) * 0.3, dtype=f32)
    blin = np.asarray(jax.random.normal(ks[2], (L0,)) * 0.1, dtype=f32)
    w1 = np.asarray(jax.random.normal(ks[3], (1, 16, 3)) * 0.3, dtype=f32)
    w2 = np.asarray(jax.random.normal(ks[4], (16, 8, 3)) * 0.2, dtype=f32)
    w3 = np.asarray(jax.random.normal(ks[5], (8, 1, 3)) * 0.2, dtype=f32)
    b3 = np.asarray(jax.random.normal(ks[6], (1,)) * 0.1, dtype=f32)
    gamma1 = np.asarray(1.0 + 0.1 * jax.random.normal(ks[7], (16,)), dtype=f32)
    beta1 = np.asarray(0.1 * jax.random.normal(ks[8], (16,)), dtype=f32)
    gamma2 = np.asarray(1.0 + 0.1 * jax.random.normal(ks[9], (8,)), dtype=f32)
    beta2 = np.asarray(0.1 * jax.random.normal(ks[10], (8,)), dtype=f32)

    params, dims = build_decoder_params(wlin, blin, w1, w2, w3, b3,
                                        gamma1, beta1, gamma2, beta2,
                                        signal_dims, batch)

    out = decoder_pallas(jnp.asarray(z), params, dims)
    out = jax.block_until_ready(out)

    ref = np_reference(z, (wlin, blin, w1, w2, w3, b3,
                           gamma1, beta1, gamma2, beta2, dims["op"]))

    # bf16 MXU operands (f32 accumulation) -> tolerance loosened vs pure f32.
    np.testing.assert_allclose(np.asarray(out), ref, rtol=5e-2, atol=5e-2)
    print("KERNEL_OK")
</pallas_src>

<mosaic_0001>
module attributes {stable_mosaic.version = 11 : i64} {
  func.func @kernel(%arg0: memref<2x8xf32, #tpu.memory_space<vmem>>, %arg1: memref<8x4xbf16, #tpu.memory_space<vmem>>, %arg2: memref<1x4xf32, #tpu.memory_space<vmem>>, %arg3: memref<48x1xf32, #tpu.memory_space<vmem>>, %arg4: memref<24x16xf32, #tpu.memory_space<vmem>>, %arg5: memref<16x1xf32, #tpu.memory_space<vmem>>, %arg6: memref<16x1xf32, #tpu.memory_space<vmem>>, %arg7: memref<24x16xbf16, #tpu.memory_space<vmem>>, %arg8: memref<48x32xf32, #tpu.memory_space<vmem>>, %arg9: memref<8x1xf32, #tpu.memory_space<vmem>>, %arg10: memref<8x1xf32, #tpu.memory_space<vmem>>, %arg11: memref<24x8xbf16, #tpu.memory_space<vmem>>, %arg12: memref<96x64xf32, #tpu.memory_space<vmem>>, %arg13: memref<1x1xf32, #tpu.memory_space<vmem>>, %arg14: memref<1x128xf32, #tpu.memory_space<vmem>>) attributes {dimension_semantics = [], scalar_prefetch = 0 : i64, scratch_operands = 0 : i64, tpu.core_type = #tpu.core_type<tc>} {
    %c0 = arith.constant 0 : index
    %c0_0 = arith.constant 0 : index
    %0 = vector.load %arg0[%c0, %c0_0] : memref<2x8xf32, #tpu.memory_space<vmem>>, vector<2x8xf32>
    %1 = arith.truncf %0 : vector<2x8xf32> to vector<2x8xbf16>
    %c0_1 = arith.constant 0 : index
    %c0_2 = arith.constant 0 : index
    %2 = vector.load %arg1[%c0_1, %c0_2] : memref<8x4xbf16, #tpu.memory_space<vmem>>, vector<8x4xbf16>
    %cst = arith.constant dense<0.000000e+00> : vector<2x4xf32>
    %3 = tpu.matmul %1, %2, %cst {dimension_numbers = #tpu.dot_dimension_numbers<[1], [0], [0], [1], [0, 0, 1, 1], [], []>} : vector<2x8xbf16>, vector<8x4xbf16>, vector<2x4xf32> -> vector<2x4xf32>
    %c0_3 = arith.constant 0 : index
    %c0_4 = arith.constant 0 : index
    %4 = vector.load %arg2[%c0_3, %c0_4] : memref<1x4xf32, #tpu.memory_space<vmem>>, vector<1x4xf32>
    %5 = vector.broadcast %4 : vector<1x4xf32> to vector<2x4xf32>
    %6 = arith.addf %3, %5 : vector<2x4xf32>
    %cst_5 = arith.constant 0.000000e+00 : f32
    %7 = vector.broadcast %cst_5 : f32 to vector<2x4xf32>
    %8 = arith.cmpf ogt, %6, %7 : vector<2x4xf32>
    %cst_6 = arith.constant 2.000000e-01 : f32
    %9 = vector.broadcast %cst_6 : f32 to vector<2x4xf32>
    %10 = arith.mulf %9, %6 : vector<2x4xf32>
    %11 = arith.select %8, %6, %10 : vector<2x4xi1>, vector<2x4xf32>
    %12 = vector.extract_strided_slice %11 {offsets = [0, 0], sizes = [1, 4], strides = [1, 1]} : vector<2x4xf32> to vector<1x4xf32>
    %13 = vector.extract_strided_slice %11 {offsets = [1, 0], sizes = [1, 4], strides = [1, 1]} : vector<2x4xf32> to vector<1x4xf32>
    %14 = tpu.concatenate %12, %13 in 1 : vector<1x4xf32>, vector<1x4xf32> -> vector<1x8xf32>
    %c0_7 = arith.constant 0 : index
    %c0_8 = arith.constant 0 : index
    %15 = vector.load %arg3[%c0_7, %c0_8] : memref<48x1xf32, #tpu.memory_space<vmem>>, vector<48x1xf32>
    %16 = vector.broadcast %15 : vector<48x1xf32> to vector<48x8xf32>
    %17 = vector.broadcast %14 : vector<1x8xf32> to vector<48x8xf32>
    %18 = arith.mulf %16, %17 : vector<48x8xf32>
    %19 = vector.extract_strided_slice %18 {offsets = [0, 0], sizes = [16, 8], strides = [1, 1]} : vector<48x8xf32> to vector<16x8xf32>
    %20 = vector.extract_strided_slice %18 {offsets = [16, 0], sizes = [16, 8], strides = [1, 1]} : vector<48x8xf32> to vector<16x8xf32>
    %21 = vector.extract_strided_slice %18 {offsets = [32, 0], sizes = [16, 8], strides = [1, 1]} : vector<48x8xf32> to vector<16x8xf32>
    %22 = tpu.concatenate %19, %20, %21 in 1 : vector<16x8xf32>, vector<16x8xf32>, vector<16x8xf32> -> vector<16x24xf32>
    %c0_9 = arith.constant 0 : index
    %c0_10 = arith.constant 0 : index
    %23 = vector.load %arg4[%c0_9, %c0_10] : memref<24x16xf32, #tpu.memory_space<vmem>>, vector<24x16xf32>
    %cst_11 = arith.constant dense<0.000000e+00> : vector<16x16xf32>
    %24 = tpu.matmul %22, %23, %cst_11 {dimension_numbers = #tpu.dot_dimension_numbers<[1], [0], [0], [1], [0, 0, 1, 1], [], []>} : vector<16x24xf32>, vector<24x16xf32>, vector<16x16xf32> -> vector<16x16xf32>
    %c0_12 = arith.constant 0 : index
    %c0_13 = arith.constant 0 : index
    %25 = vector.load %arg5[%c0_12, %c0_13] : memref<16x1xf32, #tpu.memory_space<vmem>>, vector<16x1xf32>
    %c0_14 = arith.constant 0 : index
    %c0_15 = arith.constant 0 : index
    %26 = vector.load %arg6[%c0_14, %c0_15] : memref<16x1xf32, #tpu.memory_space<vmem>>, vector<16x1xf32>
    %cst_16 = arith.constant dense<0.000000e+00> : vector<16xf32>
    %27 = vector.multi_reduction <add>, %24, %cst_16 [1] : vector<16x16xf32> to vector<16xf32>
    %28 = vector.shape_cast %27 : vector<16xf32> to vector<16x1xf32>
    %cst_17 = arith.constant 6.250000e-02 : f32
    %29 = vector.broadcast %cst_17 : f32 to vector<16x1xf32>
    %30 = arith.mulf %28, %29 : vector<16x1xf32>
    %31 = vector.broadcast %30 : vector<16x1xf32> to vector<16x16xf32>
    %32 = arith.subf %24, %31 : vector<16x16xf32>
    %33 = arith.mulf %32, %32 : vector<16x16xf32>
    %cst_18 = arith.constant dense<0.000000e+00> : vector<16xf32>
    %34 = vector.multi_reduction <add>, %33, %cst_18 [1] : vector<16x16xf32> to vector<16xf32>
    %35 = vector.shape_cast %34 : vector<16xf32> to vector<16x1xf32>
    %cst_19 = arith.constant 6.250000e-02 : f32
    %36 = vector.broadcast %cst_19 : f32 to vector<16x1xf32>
    %37 = arith.mulf %35, %36 : vector<16x1xf32>
    %cst_20 = arith.constant 9.99999974E-6 : f32
    %38 = vector.broadcast %cst_20 : f32 to vector<16x1xf32>
    %39 = arith.addf %37, %38 : vector<16x1xf32>
    %40 = math.rsqrt %39 : vector<16x1xf32>
    %41 = arith.mulf %25, %40 : vector<16x1xf32>
    %42 = vector.broadcast %41 : vector<16x1xf32> to vector<16x16xf32>
    %43 = arith.mulf %32, %42 : vector<16x16xf32>
    %44 = vector.broadcast %26 : vector<16x1xf32> to vector<16x16xf32>
    %45 = arith.addf %43, %44 : vector<16x16xf32>
    %cst_21 = arith.constant 0.000000e+00 : f32
    %46 = vector.broadcast %cst_21 : f32 to vector<16x16xf32>
    %47 = arith.cmpf ogt, %45, %46 : vector<16x16xf32>
    %cst_22 = arith.constant 2.000000e-01 : f32
    %48 = vector.broadcast %cst_22 : f32 to vector<16x16xf32>
    %49 = arith.mulf %48, %45 : vector<16x16xf32>
    %50 = arith.select %47, %45, %49 : vector<16x16xi1>, vector<16x16xf32>
    %c0_23 = arith.constant 0 : index
    %c0_24 = arith.constant 0 : index
    %51 = vector.load %arg7[%c0_23, %c0_24] : memref<24x16xbf16, #tpu.memory_space<vmem>>, vector<24x16xbf16>
    %52 = arith.truncf %50 : vector<16x16xf32> to vector<16x16xbf16>
    %cst_25 = arith.constant dense<0.000000e+00> : vector<24x16xf32>
    %53 = tpu.matmul %51, %52, %cst_25 {dimension_numbers = #tpu.dot_dimension_numbers<[1], [0], [0], [1], [0, 0, 1, 1], [], []>} : vector<24x16xbf16>, vector<16x16xbf16>, vector<24x16xf32> -> vector<24x16xf32>
    %54 = vector.extract_strided_slice %53 {offsets = [0, 0], sizes = [8, 16], strides = [1, 1]} : vector<24x16xf32> to vector<8x16xf32>
    %55 = vector.extract_strided_slice %53 {offsets = [8, 0], sizes = [8, 16], strides = [1, 1]} : vector<24x16xf32> to vector<8x16xf32>
    %56 = vector.extract_strided_slice %53 {offsets = [16, 0], sizes = [8, 16], strides = [1, 1]} : vector<24x16xf32> to vector<8x16xf32>
    %57 = tpu.concatenate %54, %55, %56 in 1 : vector<8x16xf32>, vector<8x16xf32>, vector<8x16xf32> -> vector<8x48xf32>
    %c0_26 = arith.constant 0 : index
    %c0_27 = arith.constant 0 : index
    %58 = vector.load %arg8[%c0_26, %c0_27] : memref<48x32xf32, #tpu.memory_space<vmem>>, vector<48x32xf32>
    %cst_28 = arith.constant dense<0.000000e+00> : vector<8x32xf32>
    %59 = tpu.matmul %57, %58, %cst_28 {dimension_numbers = #tpu.dot_dimension_numbers<[1], [0], [0], [1], [0, 0, 1, 1], [], []>} : vector<8x48xf32>, vector<48x32xf32>, vector<8x32xf32> -> vector<8x32xf32>
    %c0_29 = arith.constant 0 : index
    %c0_30 = arith.constant 0 : index
    %60 = vector.load %arg9[%c0_29, %c0_30] : memref<8x1xf32, #tpu.memory_space<vmem>>, vector<8x1xf32>
    %c0_31 = arith.constant 0 : index
    %c0_32 = arith.constant 0 : index
    %61 = vector.load %arg10[%c0_31, %c0_32] : memref<8x1xf32, #tpu.memory_space<vmem>>, vector<8x1xf32>
    %cst_33 = arith.constant dense<0.000000e+00> : vector<8xf32>
    %62 = vector.multi_reduction <add>, %59, %cst_33 [1] : vector<8x32xf32> to vector<8xf32>
    %63 = vector.shape_cast %62 : vector<8xf32> to vector<8x1xf32>
    %cst_34 = arith.constant 3.125000e-02 : f32
    %64 = vector.broadcast %cst_34 : f32 to vector<8x1xf32>
    %65 = arith.mulf %63, %64 : vector<8x1xf32>
    %66 = vector.broadcast %65 : vector<8x1xf32> to vector<8x32xf32>
    %67 = arith.subf %59, %66 : vector<8x32xf32>
    %68 = arith.mulf %67, %67 : vector<8x32xf32>
    %cst_35 = arith.constant dense<0.000000e+00> : vector<8xf32>
    %69 = vector.multi_reduction <add>, %68, %cst_35 [1] : vector<8x32xf32> to vector<8xf32>
    %70 = vector.shape_cast %69 : vector<8xf32> to vector<8x1xf32>
    %cst_36 = arith.constant 3.125000e-02 : f32
    %71 = vector.broadcast %cst_36 : f32 to vector<8x1xf32>
    %72 = arith.mulf %70, %71 : vector<8x1xf32>
    %cst_37 = arith.constant 9.99999974E-6 : f32
    %73 = vector.broadcast %cst_37 : f32 to vector<8x1xf32>
    %74 = arith.addf %72, %73 : vector<8x1xf32>
    %75 = math.rsqrt %74 : vector<8x1xf32>
    %76 = arith.mulf %60, %75 : vector<8x1xf32>
    %77 = vector.broadcast %76 : vector<8x1xf32> to vector<8x32xf32>
    %78 = arith.mulf %67, %77 : vector<8x32xf32>
    %79 = vector.broadcast %61 : vector<8x1xf32> to vector<8x32xf32>
    %80 = arith.addf %78, %79 : vector<8x32xf32>
    %cst_38 = arith.constant 0.000000e+00 : f32
    %81 = vector.broadcast %cst_38 : f32 to vector<8x32xf32>
    %82 = arith.cmpf ogt, %80, %81 : vector<8x32xf32>
    %cst_39 = arith.constant 2.000000e-01 : f32
    %83 = vector.broadcast %cst_39 : f32 to vector<8x32xf32>
    %84 = arith.mulf %83, %80 : vector<8x32xf32>
    %85 = arith.select %82, %80, %84 : vector<8x32xi1>, vector<8x32xf32>
    %c0_40 = arith.constant 0 : index
    %c0_41 = arith.constant 0 : index
    %86 = vector.load %arg11[%c0_40, %c0_41] : memref<24x8xbf16, #tpu.memory_space<vmem>>, vector<24x8xbf16>
    %87 = arith.truncf %85 : vector<8x32xf32> to vector<8x32xbf16>
    %cst_42 = arith.constant dense<0.000000e+00> : vector<24x32xf32>
    %88 = tpu.matmul %86, %87, %cst_42 {dimension_numbers = #tpu.dot_dimension_numbers<[1], [0], [0], [1], [0, 0, 1, 1], [], []>} : vector<24x8xbf16>, vector<8x32xbf16>, vector<24x32xf32> -> vector<24x32xf32>
    %89 = vector.extract_strided_slice %88 {offsets = [0, 0], sizes = [8, 32], strides = [1, 1]} : vector<24x32xf32> to vector<8x32xf32>
    %90 = vector.extract_strided_slice %88 {offsets = [8, 0], sizes = [8, 32], strides = [1, 1]} : vector<24x32xf32> to vector<8x32xf32>
    %91 = vector.extract_strided_slice %88 {offsets = [16, 0], sizes = [8, 32], strides = [1, 1]} : vector<24x32xf32> to vector<8x32xf32>
    %92 = tpu.concatenate %89, %90, %91 in 1 : vector<8x32xf32>, vector<8x32xf32>, vector<8x32xf32> -> vector<8x96xf32>
    %c0_43 = arith.constant 0 : index
    %c0_44 = arith.constant 0 : index
    %93 = vector.load %arg12[%c0_43, %c0_44] : memref<96x64xf32, #tpu.memory_space<vmem>>, vector<96x64xf32>
    %cst_45 = arith.constant dense<0.000000e+00> : vector<8x64xf32>
    %94 = tpu.matmul %92, %93, %cst_45 {dimension_numbers = #tpu.dot_dimension_numbers<[1], [0], [0], [1], [0, 0, 1, 1], [], []>} : vector<8x96xf32>, vector<96x64xf32>, vector<8x64xf32> -> vector<8x64xf32>
    %95 = vector.extract_strided_slice %94 {offsets = [0, 0], sizes = [1, 64], strides = [1, 1]} : vector<8x64xf32> to vector<1x64xf32>
    %c0_46 = arith.constant 0 : index
    %c0_47 = arith.constant 0 : index
    %96 = vector.load %arg13[%c0_46, %c0_47] : memref<1x1xf32, #tpu.memory_space<vmem>>, vector<1x1xf32>
    %97 = vector.broadcast %96 : vector<1x1xf32> to vector<1x64xf32>
    %98 = arith.addf %95, %97 : vector<1x64xf32>
    %cst_48 = arith.constant 0.000000e+00 : f32
    %99 = vector.broadcast %cst_48 : f32 to vector<1x64xf32>
    %100 = arith.maximumf %98, %99 : vector<1x64xf32>
    %cst_49 = arith.constant 0.000000e+00 : f32
    %101 = vector.broadcast %cst_49 : f32 to vector<1x64xf32>
    %102 = tpu.concatenate %100, %101 in 1 : vector<1x64xf32>, vector<1x64xf32> -> vector<1x128xf32>
    %c0_50 = arith.constant 0 : index
    %c0_51 = arith.constant 0 : index
    %103 = vector.load %arg14[%c0_50, %c0_51] : memref<1x128xf32, #tpu.memory_space<vmem>>, vector<1x128xf32>
    tpu.vector_store %arg14[%c0_50, %c0_51], %102 {strides = array<i32>} : memref<1x128xf32, #tpu.memory_space<vmem>>, vector<1x128xf32>,
    return
  }
}

</mosaic_0001>

<bundles_post_ra>
// kernel: tpu_custom_call.1
= control target key start
LH: loop header
LB: loop body
LE: loop exit
PB: predicated region body
PF: predicated region fallthrough
CT: control target
= control target key end

     0   :  { %s1177_s0 = inlined_call_operand.vmem [shape: f32[2,8], index: 0, kind: input, shape index: {}]   ;;  %s1178_s1 = inlined_call_operand.vmem [shape: bf16[8,4], index: 1, kind: input, shape index: {}]   ;;  %s1179_s2 = inlined_call_operand.vmem [shape: f32[1,4], index: 2, kind: input, shape index: {}]   ;;  %s1180_s3 = inlined_call_operand.vmem [shape: f32[48,1], index: 3, kind: input, shape index: {}]   ;;  %s1181_s4 = inlined_call_operand.vmem [shape: f32[24,16], index: 4, kind: input, shape index: {}]   ;;  %s1182_s5 = inlined_call_operand.vmem [shape: f32[16,1], index: 5, kind: input, shape index: {}]   ;;  %s1183_s6 = inlined_call_operand.vmem [shape: f32[16,1], index: 6, kind: input, shape index: {}]   ;;  %s1184_s7 = inlined_call_operand.vmem [shape: bf16[24,16], index: 7, kind: input, shape index: {}]   ;;  %s1185_s8 = inlined_call_operand.vmem [shape: f32[48,32], index: 8, kind: input, shape index: {}]   ;;  %s1186_s9 = inlined_call_operand.vmem [shape: f32[8,1], index: 9, kind: input, shape index: {}]   ;;  %s1187_s10 = inlined_call_operand.vmem [shape: f32[8,1], index: 10, kind: input, shape index: {}]   ;;  %s1188_s11 = inlined_call_operand.vmem [shape: bf16[24,8], index: 11, kind: input, shape index: {}]   ;;  %s1189_s12 = inlined_call_operand.vmem [shape: f32[96,64], index: 12, kind: input, shape index: {}]   ;;  %s1190_s13 = inlined_call_operand.<no memory space> [shape: f32[1,1], index: 13, kind: input, shape index: {}]   ;;  %s1191_s14 = inlined_call_operand.hbm [shape: f32[1,128], index: 14, kind: output, shape index: {}]  }
   0x1   :  { %v19_v0 = vstv %s1190_s13 }
   0x2   :  { %20 = vst [vmem:[#allocation2] sm:$0x1] %v19_v0 }
   0x3   :  { %v53_v1 = vld [vmem:[%s1178_s1] sm:$0xf]  ;;  %vm65_vm0 = vcmask 1043456   ;;  %v906_v2 = vmov 0.0   ;;  %vm907_vm1 = vmmov 0   ;;  %v121_v5 = vld [vmem:[%s1180_s3 + $0x10] sm:$0xff] }
   0x4   :  { %759 = vmatprep.subr.bf16.mxu0 %v906_v2  ;;  %v67_v3 = vsel %vm65_vm0, %v53_v1, 0  ;;  %761 = vmatprep.mubr.msk.bf16.mxu0 %vm907_vm1, %v906_v2  ;;  %v51_v4 = vld [vmem:[%s1177_s0] sm:$0x3]  ;;  %vm61_vm2 = vcmask 64512   ;;  %v908_v7 = vmov 0   ;;  %v122_v9 = vld [vmem:[%s1180_s3 + $0x18] sm:$0xff] }
   0x5   :  { %760 = vmatpush3.bf16.msra.mxu0 %v67_v3  ;;  %v52_v6 = vpack.c.bf16 %v51_v4, %v51_v4  ;;  %870 = vset.pattern.permute.xlu0 %v908_v7  ;;  %v123_v8 = vld [vmem:[%s1180_s3 + $0x20] sm:$0xff]  ;;  %v124_v10 = vld [vmem:[%s1180_s3 + $0x28] sm:$0xff] }
   0x6   :  { %137 = vperm.xlu0 %870, %v121_v5   ;;  %871 = vset.pattern.permute.xlu1 %v908_v7 }
   0x7   :  { %147 = vperm.xlu1 %871, %v123_v8  }
   0x8   :  { %762 = vmatmul.mubr.msk.bf16.vlgmr.msra.gmra.mrb[0].mxu0 %vm61_vm2, %v52_v6 }
   0x9   :  { %21 = vsyncpa [#allocation4], 0  ;;  %825 = vmatprep.mubr.msk.f32.mxu0 %vm907_vm1, %v906_v2  ;;  %v119_v11 = vld [vmem:[%s1180_s3] sm:$0xff]  ;;  %s909_s28 = smov 4   ;;  %v120_v21 = vld [vmem:[%s1180_s3 + $0x8] sm:$0xff]  ;;  %v155_v23 = vlaneseq  ;;  %vm117_vm4 = vcmask 31744  }
   0xa   :  { %142 = vperm.xlu0 %870, %v122_v9   ;;  %v712_v12 = vld [vmem:[%s1179_s2] ss:$0 sm:$0xff]  ;;  %v187_v25 = vld [vmem:[%s1181_s4 + $0x8] sm:$0xff]  ;;  %v188_v29 = vld [vmem:[%s1181_s4 + $0x10] sm:$0xff]  ;;  %s910_s3 = smov 8   ;;  %vm183_vm5 = vcmask 130048  }
   0xb   :  { %152 = vperm.xlu1 %871, %v124_v10   ;;  %v186_v24 = vld [vmem:[%s1181_s4] sm:$0xff]  ;;  %v1034_v27 = vshrl.u32 %v155_v23, 7  ;;  %s911_s4 = smov 16   ;;  %vm189_vm6 = vcmask 195584   ;;  %v272_v9 = vld [vmem:[%s1182_s5 + $0x8] sm:$0xff]  ;;  %s913_s19 = smov 32  }
   0xc   :  { %v828_v26 = vpack.c.bf16 %v187_v25, %v186_v24  ;;  %v271_v10 = vld [vmem:[%s1182_s5] sm:$0xff]  ;;  %vm406_vm9 = vcmask 261120   ;;  %vm414_vm10 = vcmask 392192   ;;  %vm596_vm12 = vcmask 523264  }
   0xd   :  { %v157_v30 = vsub.s32 0, %v1034_v27  ;;  %vm610_vm13 = vcmask 785408  }
   0xe   :  { %829 = vmatprep.subr.bf16.mxu1 %v828_v26 }
   0xf   :  { %127 = vperm.xlu1 %871, %v119_v11   ;;  %831 = vmatpush3.bf16.msra.mxu1 %v828_v26 }
  0x10   :  { %769 = vmatprep.subr.mxu1 %v188_v29 }
  0x13   :  { %770 = vmatpush3.msra.mxu1 %v188_v29 }
  0x85   :  { %v138_v22 = vpop.permute.xlu0 %137 }
  0x86   :  { %v148_v32 = vpop.permute.xlu1 %147 }
  0x89   :  { %v143_v28 = vpop.permute.xlu0 %142 }
  0x8a   :  { %v153_v37 = vpop.permute.xlu1 %152 }
  0x8e   :  { %v128_v40 = vpop.permute.xlu1 %127 }
  0xdb   :  { %v103_v13 = vpop.f32.mrb[0].mxu0 }
  0xdc   :  { %v104_v14 = vadd.f32 %v712_v12, %v103_v13  ;;  %v763_v15 = vpop.f32.mrb[1].mxu0 }
  0xdd   :  { %v106_v16 = vpop.f32.mrb[2].mxu0  ;;  %v273_v15 = vld [vmem:[%s1183_s6] sm:$0xff] }
  0xde   :  { %vm109_vm3 = vcmp.gt.f32.partialorder %v104_v14, 0.0  ;;  %v110_v17 = vmul.f32 0.2, %v104_v14  ;;  %v764_v18 = vpop.f32.mrb[3].mxu0  ;;  %v274_v16 = vld [vmem:[%s1183_s6 + $0x8] sm:$0xff] }
  0xe0   :  { %v111_v19 = vsel %vm109_vm3, %v104_v14, %v110_v17  ;;  %v872_v17 = vld [vmem:[%s1184_s7] sm:$0xff]  }
  0xe1   :  { %v113_v20 = vrot.slane %v111_v19, 1 }
  0xe3   :  { %114 = vrot.lane.b32.xlu0 %v113_v20, %s909_s28 }
  0xe7   :  { %132 = vperm.xlu0 %870, %v120_v21  }
 0x155   :  { %v115_v31 = vpop.permute.xlu0 %114 }
 0x156   :  { %v118_v33 = vsel %vm117_vm4, %v111_v19, %v115_v31 }
 0x157   :  { %v158_v34 = vrot.slane %v118_v33, %v157_v30  ;;  %v873_v33 = vld [vmem:[%s1184_s7 + $0x8] ss:$0 sps:$4 sm:$0xff]  }
 0x159   :  { %v162_v35 = vmul.f32 %v158_v34, %v143_v28  ;;  %v161_v36 = vmul.f32 %v158_v34, %v138_v22  ;;  %v164_v38 = vmul.f32 %v158_v34, %v153_v37  ;;  %v163_v39 = vmul.f32 %v158_v34, %v148_v32 }
 0x15a   :  { %v159_v44 = vmul.f32 %v158_v34, %v128_v40  ;;  %v912_v37 = vmov 0.0|0.0   ;;  %v412_v40 = vld [vmem:[%s1185_s8 + $0x20] sm:$0xff] }
 0x15b   :  { %169 = vrot.lane.b32.xlu0 %v162_v35, %s910_s3  ;;  %167 = vrot.lane.b32.xlu1 %v161_v36, %s910_s3  ;;  %v409_v35 = vld [vmem:[%s1185_s8 + $0x8] sm:$0xff]  ;;  %v410_v36 = vld [vmem:[%s1185_s8 + $0x10] sm:$0xff] }
 0x15c   :  { %841 = vmatprep.subr.bf16.mxu0 %v912_v37 }
 0x15f   :  { %177 = vrot.lane.b32.xlu0 %v164_v38, %s911_s4  ;;  %175 = vrot.lane.b32.xlu1 %v163_v39, %s911_s4 }
 0x166   :  { %v133_v41 = vpop.permute.xlu0 %132 }
 0x167   :  { %v160_v45 = vmul.f32 %v158_v34, %v133_v41  ;;  %v408_v34 = vld [vmem:[%s1185_s8] sm:$0xff]  ;;  %v413_v41 = vld [vmem:[%s1185_s8 + $0x28] sm:$0xff] }
 0x168   :  { %v833_v38 = vpack.c.bf16 %v409_v35, %v408_v34 }
 0x1cd   :  { %v168_v42 = vpop.permute.xlu1 %167  ;;  %v170_v43 = vpop.permute.xlu0 %169 }
 0x1ce   :  { %v181_v46 = vsel %vm61_vm2, %v159_v44, %v168_v42  ;;  %v182_v47 = vsel %vm61_vm2, %v160_v45, %v170_v43  ;;  %v839_v42 = vpack.c.bf16 %v413_v41, %v412_v40 }
 0x1d1   :  { %v176_v48 = vpop.permute.xlu1 %175  ;;  %v178_v49 = vpop.permute.xlu0 %177 }
 0x1d2   :  { %v185_v50 = vsel %vm183_vm5, %v182_v47, %v178_v49  ;;  %v184_v51 = vsel %vm183_vm5, %v181_v46, %v176_v48 }
 0x1d3   :  { %771 = vmatprep.mubr.msk.f32.mxu1 %vm189_vm6, %v184_v51 }
 0x1d4   :  { %772 = vmatmul.mubr.msk.f32.vlgmr.msra.gmra.mrb[0].mxu1 %vm189_vm6, %v185_v50 }
 0x1d5   :  { %776 = vmatprep.mubr.msk.bf16.mxu1 %vm183_vm5, %v872_v17  ;;  %v601_v17 = vld [vmem:[%s1189_s12 + $0x18] sm:$0xff] }
 0x2a7   :  { %v773_v52 = vpop.f32.mrb[0].mxu1 }
 0x2a8   :  { %v262_v53 = vpop.f32.mrb[1].mxu1  ;;  %v278_v54 = vsel %vm183_vm5, %v773_v52, 0.0 }
 0x2a9   :  { %279 = vadd.xlane.f32.xlu0 %v278_v54  ;;  %v275_v55 = vsel %vm183_vm5, %v262_v53, 0.0  ;;  %v489_v54 = vld [vmem:[%s1187_s10] sm:$0xff]  ;;  %s914_s10 = smov 64  }
 0x2aa   :  { %276 = vadd.xlane.f32.xlu1 %v275_v55 }
 0x336   :  { %v280_v56 = vpop.xlane.xlu0 %279 }
 0x337   :  { %v282_v57 = vmul.f32 0.0625, %v280_v56  ;;  %v277_v58 = vpop.xlane.xlu1 %276 }
 0x338   :  { %v281_v59 = vmul.f32 0.0625, %v277_v58 }
 0x339   :  { %v284_v60 = vsub.f32 %v773_v52, %v282_v57 }
 0x33a   :  { %v283_v61 = vsub.f32 %v262_v53, %v281_v59 }
 0x33b   :  { %v286_v62 = vmul.f32 %v284_v60, %v284_v60 }
 0x33c   :  { %v285_v63 = vmul.f32 %v283_v61, %v283_v61 }
 0x33d   :  { %v290_v0 = vsel %vm183_vm5, %v286_v62, 0.0 }
 0x33e   :  { %291 = vadd.xlane.f32.xlu1 %v290_v0  ;;  %v287_v1 = vsel %vm183_vm5, %v285_v63, 0.0  ;;  %v488_v63 = vld [vmem:[%s1186_s9] sm:$0xff] }
 0x33f   :  { %288 = vadd.xlane.f32.xlu0 %v287_v1 }
 0x3cb   :  { %v292_v3 = vpop.xlane.xlu1 %291 }
 0x3cc   :  { %v294_v4 = vmul.f32 0.0625, %v292_v3  ;;  %v289_v5 = vpop.xlane.xlu0 %288  ;;  %v874_v3 = vld [vmem:[%s1188_s11] sm:$0xff]  }
 0x3cd   :  { %v293_v6 = vmul.f32 0.0625, %v289_v5 }
 0x3ce   :  { %v296_v7 = vadd.f32 1e-05, %v294_v4 }
 0x3cf   :  { %v295_v8 = vadd.f32 1e-05, %v293_v6 }
 0x3d0   :  { %876 = vrsqrt.f32 %v296_v7 }
 0x3d1   :  { %878 = vrsqrt.f32 %v295_v8 }
 0x3da   :  { %v877_v11 = vpop.eup %876 }
 0x3db   :  { %v879_v12 = vpop.eup %878  ;;  %v300_v13 = vmul.f32 %v877_v11, %v272_v9 }
 0x3dc   :  { %v299_v14 = vmul.f32 %v879_v12, %v271_v10  ;;  %v875_v12 = vld [vmem:[%s1188_s11 + $0x8] ss:$0 sps:$4 sm:$0xff]  }
 0x3dd   :  { %308 = vperm.xlu1 %871, %v300_v13   ;;  %v598_v13 = vld [vmem:[%s1189_s12] sm:$0xff] }
 0x3de   :  { %303 = vperm.xlu0 %870, %v299_v14   ;;  %v599_v14 = vld [vmem:[%s1189_s12 + $0x8] sm:$0xff] }
 0x3e1   :  { %315 = vperm.xlu1 %871, %v273_v15   ;;  %v600_v15 = vld [vmem:[%s1189_s12 + $0x10] sm:$0xff] }
 0x3e2   :  { %320 = vperm.xlu0 %870, %v274_v16   ;;  %v842_v16 = vpack.c.bf16 %v599_v14, %v598_v13 }
 0x3e4   :  { %843 = vmatpush3.bf16.msra.mxu0 %v842_v16 }
 0x3e5   :  { %844 = vmatprep.subr.bf16.mxu0 %v912_v37 }
 0x45c   :  { %v309_v18 = vpop.permute.xlu1 %308 }
 0x45d   :  { %v304_v19 = vpop.permute.xlu0 %303  ;;  %v312_v21 = vmul.f32 %v309_v18, %v284_v60  ;;  %v845_v18 = vpack.c.bf16 %v601_v17, %v600_v15 }
 0x45e   :  { %v311_v20 = vmul.f32 %v304_v19, %v283_v61  ;;  %v602_v19 = vld [vmem:[%s1189_s12 + $0x20] sm:$0xff] }
 0x45f   :  { %846 = vmatpush3.bf16.msra.mxu0 %v845_v18 }
 0x460   :  { %v316_v22 = vpop.permute.xlu1 %315  ;;  %847 = vmatprep.subr.bf16.mxu0 %v912_v37 }
 0x461   :  { %v323_v23 = vadd.f32 %v316_v22, %v311_v20  ;;  %v321_v24 = vpop.permute.xlu0 %320  ;;  %v603_v20 = vld [vmem:[%s1189_s12 + $0x28] sm:$0xff]  ;;  %v604_v22 = vld [vmem:[%s1189_s12 + $0x30] sm:$0xff] }
 0x462   :  { %v324_v25 = vadd.f32 %v321_v24, %v312_v21  ;;  %v848_v21 = vpack.c.bf16 %v603_v20, %v602_v19 }
 0x463   :  { %vm325_vm7 = vcmp.gt.f32.partialorder %v323_v23, 0.0  ;;  %v327_v26 = vmul.f32 0.2, %v323_v23 }
 0x464   :  { %vm326_vm8 = vcmp.gt.f32.partialorder %v324_v25, 0.0  ;;  %v328_v28 = vmul.f32 0.2, %v324_v25  ;;  %849 = vmatpush3.bf16.msra.mxu0 %v848_v21 }
 0x465   :  { %v329_v29 = vsel %vm325_vm7, %v323_v23, %v327_v26  ;;  %v605_v23 = vld [vmem:[%s1189_s12 + $0x38] sm:$0xff]  ;;  %850 = vmatprep.subr.bf16.mxu0 %v912_v37  ;;  %v607_v26 = vld [vmem:[%s1189_s12 + $0x48] sm:$0xff] }
 0x466   :  { %v330_v31 = vsel %vm326_vm8, %v324_v25, %v328_v28  ;;  %v851_v24 = vpack.c.bf16 %v605_v23, %v604_v22  ;;  %v606_v25 = vld [vmem:[%s1189_s12 + $0x40] sm:$0xff] }
 0x467   :  { %v334_v32 = vpack.c.bf16 %v330_v31, %v329_v29  ;;  %v854_v28 = vpack.c.bf16 %v607_v26, %v606_v25  ;;  %v608_v29 = vld [vmem:[%s1189_s12 + $0x50] sm:$0xff]  ;;  %v609_v31 = vld [vmem:[%s1189_s12 + $0x58] sm:$0xff]  ;;  %s915_s12 = smov [#allocation3]  }
 0x468   :  { %852 = vmatpush3.bf16.msra.mxu0 %v851_v24 }
 0x469   :  { %774 = vmatprep.subr.bf16.mxu1 %v334_v32  ;;  %853 = vmatprep.subr.bf16.mxu0 %v912_v37 }
 0x46a   :  { %775 = vmatpush3.bf16.msra.mxu1 %v334_v32  ;;  %v857_v32 = vpack.c.bf16 %v609_v31, %v608_v29 }
 0x46b   :  { %832 = vmatprep.subr.bf16.mxu1 %v912_v37 }
 0x46c   :  { %855 = vmatpush3.bf16.msra.mxu0 %v854_v28 }
 0x46d   :  { %777 = vmatmul.mubr.msk.bf16.vlgmr.msra.gmra.mrb[4].mxu1 %vm183_vm5, %v873_v33  ;;  %856 = vmatprep.subr.bf16.mxu0 %v912_v37 }
 0x46e   :  { %792 = vmatprep.mubr.msk.f32.mxu1 %vm907_vm1, %v906_v2  ;;  %v411_v2 = vld [vmem:[%s1185_s8 + $0x18] sm:$0xff]  ;;  %834 = vmatpush3.bf16.msra.mxu1 %v833_v38  ;;  %v684_v38 = vld [vmem:[#allocation2] sm:$0x1] }
 0x46f   :  { %v836_v39 = vpack.c.bf16 %v411_v2, %v410_v36  ;;  %835 = vmatprep.subr.bf16.mxu1 %v912_v37 }
 0x470   :  { %858 = vmatpush3.bf16.msra.mxu0 %v857_v32 }
 0x472   :  { %837 = vmatpush3.bf16.msra.mxu1 %v836_v39 }
 0x473   :  { %838 = vmatprep.subr.bf16.mxu1 %v912_v37 }
 0x476   :  { %840 = vmatpush3.bf16.msra.mxu1 %v839_v42 }
 0x540   :  { %v778_v43 = vpop.f32.mrb[4].mxu1 }
 0x541   :  { %402 = vrot.lane.b32.xlu0 %v778_v43, %s913_s19  ;;  %v383_v44 = vpop.f32.mrb[5].mxu1 }
 0x542   :  { %v779_v45 = vpop.f32.mrb[6].mxu1 }
 0x543   :  { %v386_v46 = vpop.f32.mrb[7].mxu1 }
 0x544   :  { %398 = vrot.lane.b32.xlu1 %v386_v46, %s911_s4 }
 0x5b3   :  { %v403_v48 = vpop.permute.xlu0 %402 }
 0x5b6   :  { %v399_v47 = vpop.permute.xlu1 %398 }
 0x5b7   :  { %v405_v49 = vsel %vm183_vm5, %v383_v44, %v399_v47 }
 0x5b8   :  { %v407_v50 = vsel %vm406_vm9, %v405_v49, %v403_v48 }
 0x5b9   :  { %793 = vmatmul.mubr.msk.f32.vlgmr.msra.gmra.mrb[2].mxu1 %vm414_vm10, %v407_v50 }
 0x5ba   :  { %797 = vmatprep.mubr.msk.bf16.mxu1 %vm61_vm2, %v874_v3 }
 0x68c   :  { %v484_v51 = vpop.f32.mrb[2].mxu1 }
 0x68d   :  { %v794_v52 = vpop.f32.mrb[3].mxu1  ;;  %v490_v53 = vsel %vm406_vm9, %v484_v51, 0.0 }
 0x68e   :  { %491 = vadd.xlane.f32.xlu1 %v490_v53 }
 0x69f   :  { %511 = vperm.xlu1 %871, %v489_v54  }
 0x71b   :  { %v492_v55 = vpop.xlane.xlu1 %491 }
 0x71c   :  { %v493_v56 = vmul.f32 0.03125, %v492_v55 }
 0x71e   :  { %v494_v57 = vsub.f32 %v484_v51, %v493_v56 }
 0x71f   :  { %v512_v6 = vpop.permute.xlu1 %511 }
 0x720   :  { %v495_v58 = vmul.f32 %v494_v57, %v494_v57 }
 0x722   :  { %v496_v59 = vsel %vm406_vm9, %v495_v58, 0.0 }
 0x723   :  { %497 = vadd.xlane.f32.xlu0 %v496_v59 }
 0x7b0   :  { %v498_v60 = vpop.xlane.xlu0 %497 }
 0x7b1   :  { %v499_v61 = vmul.f32 0.03125, %v498_v60 }
 0x7b3   :  { %v500_v62 = vadd.f32 1e-05, %v499_v61 }
 0x7b5   :  { %880 = vrsqrt.f32 %v500_v62 }
 0x7bf   :  { %v881_v0 = vpop.eup %880 }
 0x7c0   :  { %v502_v1 = vmul.f32 %v881_v0, %v488_v63 }
 0x7c2   :  { %505 = vperm.xlu0 %870, %v502_v1  }
 0x841   :  { %v506_v4 = vpop.permute.xlu0 %505 }
 0x842   :  { %v508_v5 = vmul.f32 %v506_v4, %v494_v57 }
 0x844   :  { %v514_v7 = vadd.f32 %v512_v6, %v508_v5 }
 0x846   :  { %vm515_vm11 = vcmp.gt.f32.partialorder %v514_v7, 0.0  ;;  %v516_v8 = vmul.f32 0.2, %v514_v7 }
 0x848   :  { %v517_v9 = vsel %vm515_vm11, %v514_v7, %v516_v8 }
 0x849   :  { %v521_v10 = vpack.c.bf16 %v517_v9, %v517_v9 }
 0x84b   :  { %859 = vmatprep.subr.msk.bf16.mxu1 %vm65_vm0, %v521_v10  ;;  %v537_v11 = vsel %vm65_vm0, %v521_v10, 0 }
 0x84c   :  { %796 = vmatpush3.bf16.msra.mxu1 %v537_v11 }
 0x84f   :  { %798 = vmatmul.mubr.msk.bf16.vlgmr.msra.gmra.mrb[8].mxu1 %vm61_vm2, %v875_v12 }
 0x922   :  { %v799_v33 = vpop.f32.mrb[8].mxu1 }
 0x923   :  { %v573_v34 = vpop.f32.mrb[9].mxu1  ;;  %592 = vrot.lane.b32.xlu0 %v799_v33, %s914_s10 }
 0x924   :  { %v800_v35 = vpop.f32.mrb[10].mxu1 }
 0x925   :  { %v576_v36 = vpop.f32.mrb[11].mxu1 }
 0x926   :  { %588 = vrot.lane.b32.xlu1 %v576_v36, %s913_s19  ;;  %s704_s19 = sshll.u32 %s915_s12, 4  ;;  %s705_s19 = int_to_ptr.vmem [resolvable:$true] %s704_s19 }
 0x927   :  { %s882_s21 = scalar_lea.vmem %s705_s19, 16  ;;  %s886_s9 = scalar_lea.vmem %s705_s19, 32 }
 0x928   :  { %p883_p0 = scmp.ne.s32.totalorder %s705_s19, %s882_s21  ;;  %p887_p1 = scmp.lt.s32.totalorder %s705_s19, %s705_s19 }
 0x929   :  { %p888_p2 = scmp.lt.s32.totalorder %s886_s9, %s882_s21 }
 0x92a   :  { %687 = vperm.xlu1 %871, %v684_v38  }
 0x92b   :  { %p889_p3 = por %p888_p2, %p887_p1 }
 0x92d   :  { %p890_p4 = pnand %p889_p3, %p883_p0 }
 0x995   :  { %v593_v2 = vpop.permute.xlu0 %592 }
 0x998   :  { %v589_v37 = vpop.permute.xlu1 %588 }
 0x999   :  { %v595_v39 = vsel %vm406_vm9, %v573_v34, %v589_v37 }
 0x99a   :  { %v597_v40 = vsel %vm596_vm12, %v595_v39, %v593_v2 }
 0x99b   :  { %826 = vmatmul.mubr.msk.f32.vlgmr.msra.gmra.mrb[4].mxu0 %vm610_vm13, %v597_v40 }
 0x9a9   :  { %v688_v41 = vpop.permute.xlu1 %687 }
 0x9aa   :  { %v693_v42 = vrot.slane %v688_v41, %v157_v30 }
 0xa6e   :  { %v680_v43 = vpop.f32.mrb[4].mxu0 }
 0xa6f   :  { %v694_v44 = vadd.f32 %v693_v42, %v680_v43  ;;  %v827_v45 = vpop.f32.mrb[5].mxu0 }
 0xa71   :  { %v695_v46 = vmax.f32 %v694_v44, 0.0 }
 0xa73   :  { %v696_v47 = vsel %vm596_vm12, %v695_v46, 0.0 }
 0xa74   :  { %697 = vst [vmem:[#allocation3] sm:$0x1] %v696_v47 }
 0xa75   :  { %893 = shalt.err (!%p890_p4)
}
 0xa76   :  { %s894_s23 = scalar_lea.hbm %s1191_s14, 16 }
 0xa77   :  { %p895_p5 = scmp.ne.s32.totalorder %s1191_s14, %s894_s23  ;;  %p898_p6 = scmp.lt.u32.totalorder %s894_s23, %s1191_s14 }
 0xa79   :  { %p900_p7 = pnand %p898_p6, %p895_p5 }
 0xa7b   :  { %903 = shalt.err (!%p900_p7)
}
 0xa7c   :  { %707 = dma.vmem_to_hbm [thread:$0]  %s705_s19, 16, %s1191_s14, [#allocation4]  }
 0xa7d   :  { %904 = dma.done.wait [#allocation4], 16  }
 0xa7e   :  { %905 = vsyncadd [#allocation4], 4294967280 }
 0xa7f   :  { %711 = vsyncpa [#allocation4], 1 }

</bundles_post_ra>
